<compile_context>
chip_gen: v7x
topology: tpu7x:2x2x1
jax: 0.10.0
libtpu: 0.0.40
codegen_flags: <defaults>
</compile_context>

<pallas_src>
import jax
import jax.numpy as jnp
from jax.experimental import pallas as pl
from jax.experimental.pallas import tpu as pltpu

LANES = 128


def _round_up(x, m):
    return ((x + m - 1) // m) * m


def gcn_kernel(x_ref, a_ref, w1_ref, b1_ref, w2_ref, b2_ref,
               wfc_ref, bfc_ref, out_ref):
    # Lane-stacked layout: columns hold the B graphs side by side.
    #   x_ref: (N, B*F) bf16      a_ref: (N, N) bf16
    #   w*_ref: block-diag kron(I_B, W) bf16   b*_ref: tiled biases f32
    #   out_ref: (N, Lp) f32, Lp % 128 == 0 (lane-dense store), first B*C used.
    a = a_ref[...]

    # Layer 1: relu(A_hat @ (X @ W1 + b1))   -- one (N,N)@(N,B*H1) aggregation
    h = jnp.dot(x_ref[...], w1_ref[...],
                preferred_element_type=jnp.float32) + b1_ref[...]
    h = jnp.maximum(
        jnp.dot(a, h.astype(jnp.bfloat16), preferred_element_type=jnp.float32),
        0.0)

    # Layer 2: relu(A_hat @ (H1 @ W2 + b2))
    h = jnp.dot(h.astype(jnp.bfloat16), w2_ref[...],
                preferred_element_type=jnp.float32) + b2_ref[...]
    h = jnp.maximum(
        jnp.dot(a, h.astype(jnp.bfloat16), preferred_element_type=jnp.float32),
        0.0)

    # Final classifier (weights zero-padded to the lane-dense packed slab).
    out = jnp.dot(h.astype(jnp.bfloat16), wfc_ref[...],
                  preferred_element_type=jnp.float32) + bfc_ref[...]
    out_ref[...] = out.astype(out_ref.dtype)


def gcn_forward(X, A_hat, params):
    """Fused GCN forward.

    X:      [N, F] (single graph, matches the torch forward signature)
            or [B, N, F] (batch of feature matrices sharing one adjacency).
    A_hat:  [N, N] dense normalized adjacency.
    params: (w1 [F,H1], b1 [1,H1], w2 [H1,H2], b2 [1,H2], wfc [H2,C], bfc [1,C])
    Returns f32 logits, shape [N, C] or [B, N, C].
    """
    w1, b1, w2, b2, wfc, bfc = params
    squeeze_batch = (X.ndim == 2)
    if squeeze_batch:
        X = X[None]
    B, N, F = X.shape
    H1 = w1.shape[1]
    H2 = w2.shape[1]
    C = wfc.shape[1]
    BF, BH1, BH2, BC = B * F, B * H1, B * H2, B * C
    Lp = _round_up(BC, LANES)            # packed, lane-dense output slab

    eye = jnp.eye(B, dtype=jnp.float32)

    # Fold batch into lanes (done once in the wrapper, outside the kernel).
    xs = jnp.transpose(X, (1, 0, 2)).reshape(N, BF).astype(jnp.bfloat16)
    ab = A_hat.astype(jnp.bfloat16)
    w1b = jnp.kron(eye, w1.astype(jnp.float32)).astype(jnp.bfloat16)      # (BF, BH1)
    w2b = jnp.kron(eye, w2.astype(jnp.float32)).astype(jnp.bfloat16)      # (BH1, BH2)
    wfcb = jnp.zeros((BH2, Lp), jnp.bfloat16).at[:, :BC].set(
        jnp.kron(eye, wfc.astype(jnp.float32)).astype(jnp.bfloat16))      # (BH2, Lp)
    b1f = jnp.tile(b1.astype(jnp.float32), (1, B))                        # (1, BH1)
    b2f = jnp.tile(b2.astype(jnp.float32), (1, B))                        # (1, BH2)
    bfcf = jnp.zeros((1, Lp), jnp.float32).at[:, :BC].set(
        jnp.tile(bfc.astype(jnp.float32), (1, B)))                        # (1, Lp)

    flops = 2 * N * (BF * BH1 + N * BH1 + BH1 * BH2 + N * BH2 + BH2 * Lp)
    bytes_accessed = ((xs.size + ab.size + w1b.size + w2b.size + wfcb.size) * 2
                      + (b1f.size + b2f.size + bfcf.size + N * Lp) * 4)

    def full_block(shape):
        # Full-extent resident block; index_map ignores the (trivial) grid index.
        return pl.BlockSpec(shape, lambda i: (0,) * len(shape))

    out = pl.pallas_call(
        gcn_kernel,
        out_shape=jax.ShapeDtypeStruct((N, Lp), jnp.float32),
        grid=(1,),
        in_specs=[full_block(t.shape)
                  for t in (xs, ab, w1b, b1f, w2b, b2f, wfcb, bfcf)],
        out_specs=full_block((N, Lp)),
        compiler_params=pltpu.CompilerParams(
            dimension_semantics=("arbitrary",),
            vmem_limit_bytes=48 << 20),
        cost_estimate=pl.CostEstimate(flops=flops, transcendentals=0,
                                      bytes_accessed=bytes_accessed),
    )(xs, ab, w1b, b1f, w2b, b2f, wfcb, bfcf)

    # Unpack the lane-stacked logits: (N, B*C) -> (B, N, C).
    out = out[:, :BC].reshape(N, B, C).transpose(1, 0, 2)
    if squeeze_batch:
        out = out[0]
    return out


if __name__ == "__main__":
    key = jax.random.PRNGKey(0)
    # Small shapes consistent with the module: B graphs (shared adjacency),
    # N nodes, X_size input features, hidden_size_1, hidden_size_2, num_classes.
    B, N, X_size, H1, H2, C = 4, 8, 16, 32, 16, 4
    ks = jax.random.split(key, 8)

    # Parameter init mirroring the module's __init__ shapes.
    var1 = 2.0 / (H1 + X_size)
    var2 = 2.0 / (H2 + H1)
    w1 = (var1 * jax.random.normal(ks[0], (X_size, H1))).astype(jnp.float32)
    b1 = (var1 * jax.random.normal(ks[1], (1, H1))).astype(jnp.float32)
    w2 = (var2 * jax.random.normal(ks[2], (H1, H2))).astype(jnp.float32)
    b2 = (var2 * jax.random.normal(ks[3], (1, H2))).astype(jnp.float32)
    # fc1 = nn.Linear(H2, C): weight (C, H2), bias (C,) -> pre-transposed here.
    lim = 1.0 / (H2 ** 0.5)
    wfc = jax.random.uniform(ks[4], (H2, C), jnp.float32, -lim, lim)
    bfc = jax.random.uniform(ks[5], (1, C), jnp.float32, -lim, lim)

    # Inputs: batch of node-feature matrices + symmetric normalized adjacency.
    X = jax.random.normal(ks[6], (B, N, X_size), jnp.float32)
    A = (jax.random.uniform(ks[7], (N, N)) < 0.3).astype(jnp.float32)
    A = jnp.minimum(A + A.T + jnp.eye(N, dtype=jnp.float32), 1.0)
    dinv = 1.0 / jnp.sqrt(jnp.sum(A, axis=1))
    A_hat = A * dinv[:, None] * dinv[None, :]

    params = (w1, b1, w2, b2, wfc, bfc)
    out = gcn_forward(X, A_hat, params)        # batched path (single kernel call)
    out1 = gcn_forward(X[0], A_hat, params)    # single-graph path (module semantics)
    jax.block_until_ready((out, out1))

    # Pure-JAX f32 reference.
    def ref_fwd(x):
        h = jnp.maximum(A_hat @ (x @ w1 + b1), 0.0)
        h = jnp.maximum(A_hat @ (h @ w2 + b2), 0.0)
        return h @ wfc + bfc
    ref = jax.vmap(ref_fwd)(X)

    assert out.shape == (B, N, C)
    assert out1.shape == (N, C)
    # bf16 MXU operands -> loosened tolerance vs the f32 reference.
    assert jnp.allclose(out, ref, atol=3e-2, rtol=3e-2), "kernel/reference mismatch"
    # Zero-padded block-diag lanes add exact zeros, so batched/single should agree tightly.
    assert jnp.allclose(out1, out[0], atol=1e-5, rtol=1e-5), "batched/single mismatch"

    print("KERNEL_OK")
</pallas_src>

<mosaic_0001>
module attributes {stable_mosaic.version = 11 : i64} {
  func.func @gcn_kernel(%arg0: i32, %arg1: memref<8x64xbf16, #tpu.memory_space<vmem>>, %arg2: memref<8x8xbf16, #tpu.memory_space<vmem>>, %arg3: memref<64x128xbf16, #tpu.memory_space<vmem>>, %arg4: memref<1x128xf32, #tpu.memory_space<vmem>>, %arg5: memref<128x64xbf16, #tpu.memory_space<vmem>>, %arg6: memref<1x64xf32, #tpu.memory_space<vmem>>, %arg7: memref<64x128xbf16, #tpu.memory_space<vmem>>, %arg8: memref<1x128xf32, #tpu.memory_space<vmem>>, %arg9: memref<8x128xf32, #tpu.memory_space<vmem>>) attributes {dimension_semantics = [#tpu.dimension_semantics<arbitrary>], iteration_bounds = array<i64: 1>, scalar_prefetch = 0 : i64, scratch_operands = 0 : i64, tpu.core_type = #tpu.core_type<tc>, window_params = [{pipeline_mode = #tpu.pipeline_mode<synchronous>, transform_indices = @transform_0, window_bounds = array<i64: 8, 64>}, {pipeline_mode = #tpu.pipeline_mode<synchronous>, transform_indices = @transform_1, window_bounds = array<i64: 8, 8>}, {pipeline_mode = #tpu.pipeline_mode<synchronous>, transform_indices = @transform_2, window_bounds = array<i64: 64, 128>}, {pipeline_mode = #tpu.pipeline_mode<synchronous>, transform_indices = @transform_3, window_bounds = array<i64: 1, 128>}, {pipeline_mode = #tpu.pipeline_mode<synchronous>, transform_indices = @transform_4, window_bounds = array<i64: 128, 64>}, {pipeline_mode = #tpu.pipeline_mode<synchronous>, transform_indices = @transform_5, window_bounds = array<i64: 1, 64>}, {pipeline_mode = #tpu.pipeline_mode<synchronous>, transform_indices = @transform_6, window_bounds = array<i64: 64, 128>}, {pipeline_mode = #tpu.pipeline_mode<synchronous>, transform_indices = @transform_7, window_bounds = array<i64: 1, 128>}, {pipeline_mode = #tpu.pipeline_mode<synchronous>, transform_indices = @transform_8, window_bounds = array<i64: 8, 128>}]} {
    %c0 = arith.constant 0 : index
    %c0_0 = arith.constant 0 : index
    %0 = vector.load %arg2[%c0, %c0_0] : memref<8x8xbf16, #tpu.memory_space<vmem>>, vector<8x8xbf16>
    %c0_1 = arith.constant 0 : index
    %c0_2 = arith.constant 0 : index
    %1 = vector.load %arg1[%c0_1, %c0_2] : memref<8x64xbf16, #tpu.memory_space<vmem>>, vector<8x64xbf16>
    %c0_3 = arith.constant 0 : index
    %c0_4 = arith.constant 0 : index
    %2 = vector.load %arg3[%c0_3, %c0_4] : memref<64x128xbf16, #tpu.memory_space<vmem>>, vector<64x128xbf16>
    %cst = arith.constant dense<0.000000e+00> : vector<8x128xf32>
    %3 = tpu.matmul %1, %2, %cst {dimension_numbers = #tpu.dot_dimension_numbers<[1], [0], [0], [1], [0, 0, 1, 1], [], []>} : vector<8x64xbf16>, vector<64x128xbf16>, vector<8x128xf32> -> vector<8x128xf32>
    %c0_5 = arith.constant 0 : index
    %c0_6 = arith.constant 0 : index
    %4 = vector.load %arg4[%c0_5, %c0_6] : memref<1x128xf32, #tpu.memory_space<vmem>>, vector<1x128xf32>
    %5 = vector.broadcast %4 : vector<1x128xf32> to vector<8x128xf32>
    %6 = arith.addf %3, %5 : vector<8x128xf32>
    %7 = arith.truncf %6 : vector<8x128xf32> to vector<8x128xbf16>
    %cst_7 = arith.constant dense<0.000000e+00> : vector<8x128xf32>
    %8 = tpu.matmul %0, %7, %cst_7 {dimension_numbers = #tpu.dot_dimension_numbers<[1], [0], [0], [1], [0, 0, 1, 1], [], []>} : vector<8x8xbf16>, vector<8x128xbf16>, vector<8x128xf32> -> vector<8x128xf32>
    %cst_8 = arith.constant 0.000000e+00 : f32
    %9 = vector.broadcast %cst_8 : f32 to vector<8x128xf32>
    %10 = arith.maximumf %8, %9 : vector<8x128xf32>
    %11 = arith.truncf %10 : vector<8x128xf32> to vector<8x128xbf16>
    %c0_9 = arith.constant 0 : index
    %c0_10 = arith.constant 0 : index
    %12 = vector.load %arg5[%c0_9, %c0_10] : memref<128x64xbf16, #tpu.memory_space<vmem>>, vector<128x64xbf16>
    %cst_11 = arith.constant dense<0.000000e+00> : vector<8x64xf32>
    %13 = tpu.matmul %11, %12, %cst_11 {dimension_numbers = #tpu.dot_dimension_numbers<[1], [0], [0], [1], [0, 0, 1, 1], [], []>} : vector<8x128xbf16>, vector<128x64xbf16>, vector<8x64xf32> -> vector<8x64xf32>
    %c0_12 = arith.constant 0 : index
    %c0_13 = arith.constant 0 : index
    %14 = vector.load %arg6[%c0_12, %c0_13] : memref<1x64xf32, #tpu.memory_space<vmem>>, vector<1x64xf32>
    %15 = vector.broadcast %14 : vector<1x64xf32> to vector<8x64xf32>
    %16 = arith.addf %13, %15 : vector<8x64xf32>
    %17 = arith.truncf %16 : vector<8x64xf32> to vector<8x64xbf16>
    %cst_14 = arith.constant dense<0.000000e+00> : vector<8x64xf32>
    %18 = tpu.matmul %0, %17, %cst_14 {dimension_numbers = #tpu.dot_dimension_numbers<[1], [0], [0], [1], [0, 0, 1, 1], [], []>} : vector<8x8xbf16>, vector<8x64xbf16>, vector<8x64xf32> -> vector<8x64xf32>
    %cst_15 = arith.constant 0.000000e+00 : f32
    %19 = vector.broadcast %cst_15 : f32 to vector<8x64xf32>
    %20 = arith.maximumf %18, %19 : vector<8x64xf32>
    %21 = arith.truncf %20 : vector<8x64xf32> to vector<8x64xbf16>
    %c0_16 = arith.constant 0 : index
    %c0_17 = arith.constant 0 : index
    %22 = vector.load %arg7[%c0_16, %c0_17] : memref<64x128xbf16, #tpu.memory_space<vmem>>, vector<64x128xbf16>
    %cst_18 = arith.constant dense<0.000000e+00> : vector<8x128xf32>
    %23 = tpu.matmul %21, %22, %cst_18 {dimension_numbers = #tpu.dot_dimension_numbers<[1], [0], [0], [1], [0, 0, 1, 1], [], []>} : vector<8x64xbf16>, vector<64x128xbf16>, vector<8x128xf32> -> vector<8x128xf32>
    %c0_19 = arith.constant 0 : index
    %c0_20 = arith.constant 0 : index
    %24 = vector.load %arg8[%c0_19, %c0_20] : memref<1x128xf32, #tpu.memory_space<vmem>>, vector<1x128xf32>
    %25 = vector.broadcast %24 : vector<1x128xf32> to vector<8x128xf32>
    %26 = arith.addf %23, %25 : vector<8x128xf32>
    %c0_21 = arith.constant 0 : index
    %c0_22 = arith.constant 0 : index
    %27 = vector.load %arg9[%c0_21, %c0_22] : memref<8x128xf32, #tpu.memory_space<vmem>>, vector<8x128xf32>
    tpu.vector_store %arg9[%c0_21, %c0_22], %26 {strides = array<i32>} : memref<8x128xf32, #tpu.memory_space<vmem>>, vector<8x128xf32>,
    return
  }
  func.func @transform_0(%arg0: i32) -> (i32, i32) {
    %c0_i32 = arith.constant 0 : i32
    %c0_i32_0 = arith.constant 0 : i32
    %c0_i32_1 = arith.constant 0 : i32
    return %c0_i32, %c0_i32_0 : i32, i32
  }
  func.func @transform_1(%arg0: i32) -> (i32, i32) {
    %c0_i32 = arith.constant 0 : i32
    %c0_i32_0 = arith.constant 0 : i32
    %c0_i32_1 = arith.constant 0 : i32
    return %c0_i32, %c0_i32_0 : i32, i32
  }
  func.func @transform_2(%arg0: i32) -> (i32, i32) {
    %c0_i32 = arith.constant 0 : i32
    %c0_i32_0 = arith.constant 0 : i32
    %c0_i32_1 = arith.constant 0 : i32
    return %c0_i32, %c0_i32_0 : i32, i32
  }
  func.func @transform_3(%arg0: i32) -> (i32, i32) {
    %c0_i32 = arith.constant 0 : i32
    %c0_i32_0 = arith.constant 0 : i32
    %c0_i32_1 = arith.constant 0 : i32
    return %c0_i32, %c0_i32_0 : i32, i32
  }
  func.func @transform_4(%arg0: i32) -> (i32, i32) {
    %c0_i32 = arith.constant 0 : i32
    %c0_i32_0 = arith.constant 0 : i32
    %c0_i32_1 = arith.constant 0 : i32
    return %c0_i32, %c0_i32_0 : i32, i32
  }
  func.func @transform_5(%arg0: i32) -> (i32, i32) {
    %c0_i32 = arith.constant 0 : i32
    %c0_i32_0 = arith.constant 0 : i32
    %c0_i32_1 = arith.constant 0 : i32
    return %c0_i32, %c0_i32_0 : i32, i32
  }
  func.func @transform_6(%arg0: i32) -> (i32, i32) {
    %c0_i32 = arith.constant 0 : i32
    %c0_i32_0 = arith.constant 0 : i32
    %c0_i32_1 = arith.constant 0 : i32
    return %c0_i32, %c0_i32_0 : i32, i32
  }
  func.func @transform_7(%arg0: i32) -> (i32, i32) {
    %c0_i32 = arith.constant 0 : i32
    %c0_i32_0 = arith.constant 0 : i32
    %c0_i32_1 = arith.constant 0 : i32
    return %c0_i32, %c0_i32_0 : i32, i32
  }
  func.func @transform_8(%arg0: i32) -> (i32, i32) {
    %c0_i32 = arith.constant 0 : i32
    %c0_i32_0 = arith.constant 0 : i32
    %c0_i32_1 = arith.constant 0 : i32
    return %c0_i32, %c0_i32_0 : i32, i32
  }
}

</mosaic_0001>

<bundles_post_ra>
// kernel: tpu_custom_call.1
= control target key start
LH: loop header
LB: loop body
LE: loop exit
PB: predicated region body
PF: predicated region fallthrough
CT: control target
= control target key end

     0   :  { %v566_v1 = vmov 0.0   ;;  %vm567_vm0 = vmmov 0   ;;  %s723_s0 = inlined_call_operand.vmem [shape: bf16[8,64], index: 0, kind: input, shape index: {}]   ;;  %s724_s1 = inlined_call_operand.vmem [shape: bf16[8,8], index: 1, kind: input, shape index: {}]   ;;  %s725_s2 = inlined_call_operand.vmem [shape: bf16[64,128], index: 2, kind: input, shape index: {}]   ;;  %s726_s3 = inlined_call_operand.vmem [shape: f32[1,128], index: 3, kind: input, shape index: {}]   ;;  %s727_s4 = inlined_call_operand.vmem [shape: bf16[128,64], index: 4, kind: input, shape index: {}]   ;;  %s728_s5 = inlined_call_operand.vmem [shape: f32[1,64], index: 5, kind: input, shape index: {}]   ;;  %s729_s6 = inlined_call_operand.vmem [shape: bf16[64,128], index: 6, kind: input, shape index: {}]   ;;  %s730_s7 = inlined_call_operand.vmem [shape: f32[1,128], index: 7, kind: input, shape index: {}]   ;;  %s731_s8 = inlined_call_operand.hbm [shape: f32[8,128], index: 8, kind: output, shape index: {}]  }
   0x1   :  { %v526_v0 = vld [vmem:[%s725_s2] sm:$0xff]   ;;  %467 = vmatprep.subr.bf16.mxu0 %v566_v1  ;;  %479 = vmatprep.subr.bf16.mxu1 %v566_v1  ;;  %v527_v2 = vld [vmem:[%s725_s2 + $0x8] sm:$0xff]   ;;  %v528_v3 = vld [vmem:[%s725_s2 + $0x10] sm:$0xff]  }
   0x2   :  { %468 = vmatpush3.bf16.msra.mxu0 %v526_v0  ;;  %475 = vmatprep.mubr.msk.bf16.mxu0 %vm567_vm0, %v566_v1  ;;  %v529_v4 = vld [vmem:[%s725_s2 + $0x18] sm:$0xff]  }
   0x3   :  { %469 = vmatprep.subr.bf16.mxu0 %v566_v1  ;;  %481 = vmatprep.mubr.msk.bf16.mxu1 %vm567_vm0, %v566_v1 }
   0x6   :  { %470 = vmatpush3.bf16.msra.mxu0 %v527_v2 }
   0x7   :  { %471 = vmatprep.subr.bf16.mxu0 %v566_v1 }
   0xa   :  { %472 = vmatpush3.bf16.msra.mxu0 %v528_v3 }
   0xb   :  { %473 = vmatprep.subr.bf16.mxu0 %v566_v1 }
   0xc   :  { %13 = vsyncpa [#allocation3], 0  ;;  %v32_v5 = vld [vmem:[%s723_s0] sm:$0xf]  ;;  %vm72_vm1 = vcmask 523264   ;;  %vm121_vm2 = vcmask 1043456  }
   0xd   :  { %v421_v6 = vld [vmem:[%s726_s3] ss:$0 sm:$0xff]  ;;  %vm117_vm3 = vcmask 64512   ;;  %v531_v16 = vld [vmem:[%s727_s4 + $0x8] sm:$0xff]   ;;  %v532_v17 = vld [vmem:[%s727_s4 + $0x10] sm:$0xff]   ;;  %s568_s17 = smov [#allocation2]  }
   0xe   :  { %474 = vmatpush3.bf16.msra.mxu0 %v529_v4  ;;  %v31_v14 = vld [vmem:[%s724_s1] sm:$0xf]  ;;  %v533_v18 = vld [vmem:[%s727_s4 + $0x18] sm:$0xff]   ;;  %v535_v20 = vld [vmem:[%s727_s4 + $0x28] sm:$0xff]   ;;  %s413_s18 = sshll.u32 %s568_s17, 4  ;;  %s414_s18 = int_to_ptr.vmem [resolvable:$true] %s413_s18 }
   0xf   :  { %505 = vmatprep.subr.bf16.mxu0 %v566_v1  ;;  %v530_v15 = vld [vmem:[%s727_s4] sm:$0xff]   ;;  %v536_v21 = vld [vmem:[%s727_s4 + $0x30] sm:$0xff]   ;;  %v537_v22 = vld [vmem:[%s727_s4 + $0x38] sm:$0xff]   ;;  %p547_p1 = scmp.lt.s32.totalorder %s414_s18, %s414_s18 }
  0x10   :  { %v534_v19 = vld [vmem:[%s727_s4 + $0x20] sm:$0xff]   ;;  %v539_v38 = vld [vmem:[%s729_s6 + $0x8] sm:$0xff]   ;;  %v540_v39 = vld [vmem:[%s729_s6 + $0x10] sm:$0xff]  }
  0x11   :  { %476 = vmatmul.mubr.msk.bf16.vlgmr.msra.gmra.mrb[0].mxu0 %vm72_vm1, %v32_v5  ;;  %v428_v29 = vld [vmem:[%s728_s5] ss:$0 sm:$0xff]  ;;  %v541_v40 = vld [vmem:[%s729_s6 + $0x18] sm:$0xff]  }
  0x12   :  { %507 = vmatprep.mubr.msk.bf16.mxu0 %vm567_vm0, %v566_v1  ;;  %v538_v37 = vld [vmem:[%s729_s6] sm:$0xff]   ;;  %s542_s6 = scalar_lea.vmem %s414_s18, 128 }
  0x13   :  { %v438_v47 = vld [vmem:[%s730_s7] ss:$0 sm:$0xff]  ;;  %p543_p0 = scmp.ne.s32.totalorder %s414_s18, %s542_s6  ;;  %p548_p2 = scmp.lt.s32.totalorder %s542_s6, %s542_s6 }
  0x15   :  { %p549_p3 = por %p548_p2, %p547_p1 }
  0x17   :  { %p550_p4 = pnand %p549_p3, %p543_p0 }
  0xe4   :  { %v110_v7 = vpop.f32.mrb[0].mxu0 }
  0xe5   :  { %v111_v8 = vadd.f32 %v421_v6, %v110_v7  ;;  %v477_v9 = vpop.f32.mrb[1].mxu0 }
  0xe6   :  { %v113_v10 = vpop.f32.mrb[2].mxu0 }
  0xe7   :  { %v116_v11 = vpack.c.bf16 %v111_v8, %v111_v8  ;;  %v478_v12 = vpop.f32.mrb[3].mxu0 }
  0xe9   :  { %v123_v13 = vsel %vm121_vm2, %v116_v11, 0 }
  0xea   :  { %480 = vmatpush3.bf16.msra.mxu1 %v123_v13 }
  0xeb   :  { %485 = vmatprep.subr.bf16.mxu1 %v566_v1 }
  0xed   :  { %482 = vmatmul.mubr.msk.bf16.vlgmr.msra.gmra.mrb[0].mxu1 %vm117_vm3, %v31_v14 }
  0xee   :  { %486 = vmatpush3.bf16.msra.mxu1 %v530_v15  ;;  %501 = vmatprep.mubr.msk.bf16.mxu1 %vm567_vm0, %v566_v1 }
  0xef   :  { %487 = vmatprep.subr.bf16.mxu1 %v566_v1 }
  0xf2   :  { %488 = vmatpush3.bf16.msra.mxu1 %v531_v16 }
  0xf3   :  { %489 = vmatprep.subr.bf16.mxu1 %v566_v1 }
  0xf6   :  { %490 = vmatpush3.bf16.msra.mxu1 %v532_v17 }
  0xf7   :  { %491 = vmatprep.subr.bf16.mxu1 %v566_v1 }
  0xfa   :  { %492 = vmatpush3.bf16.msra.mxu1 %v533_v18 }
  0xfb   :  { %493 = vmatprep.subr.bf16.mxu1 %v566_v1 }
  0xfe   :  { %494 = vmatpush3.bf16.msra.mxu1 %v534_v19 }
  0xff   :  { %495 = vmatprep.subr.bf16.mxu1 %v566_v1 }
 0x102   :  { %496 = vmatpush3.bf16.msra.mxu1 %v535_v20 }
 0x103   :  { %497 = vmatprep.subr.bf16.mxu1 %v566_v1 }
 0x106   :  { %498 = vmatpush3.bf16.msra.mxu1 %v536_v21 }
 0x107   :  { %499 = vmatprep.subr.bf16.mxu1 %v566_v1 }
 0x10a   :  { %500 = vmatpush3.bf16.msra.mxu1 %v537_v22 }
 0x1c0   :  { %v159_v23 = vpop.f32.mrb[0].mxu1 }
 0x1c1   :  { %v165_v24 = vmax.f32 %v159_v23, 0.0  ;;  %v483_v25 = vpop.f32.mrb[1].mxu1 }
 0x1c2   :  { %v162_v26 = vpop.f32.mrb[2].mxu1 }
 0x1c3   :  { %v166_v27 = vpack.c.bf16 %v165_v24, %v165_v24  ;;  %v484_v28 = vpop.f32.mrb[3].mxu1 }
 0x1c5   :  { %502 = vmatmul.mubr.bf16.vlgmr.msra.gmra.mrb[4].mxu1 %v166_v27 }
 0x298   :  { %v272_v30 = vpop.f32.mrb[4].mxu1 }
 0x299   :  { %v273_v31 = vadd.f32 %v428_v29, %v272_v30  ;;  %v503_v32 = vpop.f32.mrb[5].mxu1 }
 0x29a   :  { %v275_v33 = vpop.f32.mrb[6].mxu1 }
 0x29b   :  { %v278_v34 = vpack.c.bf16 %v273_v31, %v273_v31  ;;  %v504_v35 = vpop.f32.mrb[7].mxu1 }
 0x29d   :  { %v280_v36 = vsel %vm121_vm2, %v278_v34, 0 }
 0x29e   :  { %506 = vmatpush3.bf16.msra.mxu0 %v280_v36 }
 0x29f   :  { %511 = vmatprep.subr.bf16.mxu0 %v566_v1 }
 0x2a1   :  { %508 = vmatmul.mubr.msk.bf16.vlgmr.msra.gmra.mrb[4].mxu0 %vm117_vm3, %v31_v14 }
 0x2a2   :  { %512 = vmatpush3.bf16.msra.mxu0 %v538_v37  ;;  %519 = vmatprep.mubr.msk.bf16.mxu0 %vm567_vm0, %v566_v1 }
 0x2a3   :  { %513 = vmatprep.subr.bf16.mxu0 %v566_v1 }
 0x2a6   :  { %514 = vmatpush3.bf16.msra.mxu0 %v539_v38 }
 0x2a7   :  { %515 = vmatprep.subr.bf16.mxu0 %v566_v1 }
 0x2aa   :  { %516 = vmatpush3.bf16.msra.mxu0 %v540_v39 }
 0x2ab   :  { %517 = vmatprep.subr.bf16.mxu0 %v566_v1 }
 0x2ae   :  { %518 = vmatpush3.bf16.msra.mxu0 %v541_v40 }
 0x374   :  { %v316_v41 = vpop.f32.mrb[4].mxu0 }
 0x375   :  { %v322_v42 = vmax.f32 %v316_v41, 0.0  ;;  %v509_v43 = vpop.f32.mrb[5].mxu0 }
 0x376   :  { %v319_v44 = vpop.f32.mrb[6].mxu0 }
 0x377   :  { %v323_v45 = vpack.c.bf16 %v322_v42, %v322_v42  ;;  %v510_v46 = vpop.f32.mrb[7].mxu0 }
 0x379   :  { %520 = vmatmul.mubr.msk.bf16.vlgmr.msra.gmra.mrb[8].mxu0 %vm72_vm1, %v323_v45 }
 0x44c   :  { %v400_v48 = vpop.f32.mrb[8].mxu0 }
 0x44d   :  { %v401_v49 = vadd.f32 %v438_v47, %v400_v48  ;;  %v521_v50 = vpop.f32.mrb[9].mxu0 }
 0x44e   :  { %v403_v51 = vpop.f32.mrb[10].mxu0 }
 0x44f   :  { %406 = vst [vmem:[#allocation2] sm:$0xff] %v401_v49  ;;  %v522_v52 = vpop.f32.mrb[11].mxu0 }
 0x450   :  { %553 = shalt.err (!%p550_p4)
}
 0x451   :  { %s554_s7 = scalar_lea.hbm %s731_s8, 128 }
 0x452   :  { %p555_p5 = scmp.ne.s32.totalorder %s731_s8, %s554_s7  ;;  %p558_p6 = scmp.lt.u32.totalorder %s554_s7, %s731_s8 }
 0x454   :  { %p560_p7 = pnand %p558_p6, %p555_p5 }
 0x456   :  { %563 = shalt.err (!%p560_p7)
}
 0x457   :  { %416 = dma.vmem_to_hbm [thread:$0]  %s414_s18, 128, %s731_s8, [#allocation3]  }
 0x458   :  { %564 = dma.done.wait [#allocation3], 128  }
 0x459   :  { %565 = vsyncadd [#allocation3], 4294967168 }
 0x45a   :  { %420 = vsyncpa [#allocation3], 1 }

</bundles_post_ra>
